<compile_context>
chip_gen: v6e
topology: v6e:2x2x1
jax: 0.10.0
libtpu: 0.0.40
codegen_flags: <defaults>
</compile_context>

<pallas_src>
import jax
import jax.numpy as jnp
from jax.experimental import pallas as pl
from jax.experimental.pallas import tpu as pltpu

F32 = jnp.float32
BF16 = jnp.bfloat16
IN_DIM = 50        # seq feature dim after squeeze(1)
H1 = 50            # Linear(50, 50, bias=False)
H2 = 1024          # hidden_dim * 4
CLASSES = 6        # seq_fc output
NF = 128           # lane-dense padded output width (>= CLASSES)


def _round_up(v, m):
    return ((v + m - 1) // m) * m


def seqpeptide_kernel(seq_ref, w1_ref, w2_ref, b2_ref, w3f_ref, bff_ref,
                      out_ref):
    x = seq_ref[...]                                               # (TB, 50) f32
    # Layer 1 (tiny, f32): Linear(50,50,bias=False) + ReLU
    h = jnp.maximum(jnp.dot(x, w1_ref[...],
                            preferred_element_type=F32), 0.0)      # (TB, 50)
    # Layer 2 (bf16 operands, f32 accum): Linear(50,1024) + ReLU
    h = jnp.maximum(jnp.dot(h.astype(BF16), w2_ref[...],
                            preferred_element_type=F32)
                    + b2_ref[...], 0.0)                            # (TB, 1024)
    # Fused layers 3+4 (bf16 operands, f32 accum): (TB,1024)@(1024,128)
    out_ref[...] = (jnp.dot(h.astype(BF16), w3f_ref[...],
                            preferred_element_type=F32)
                    + bff_ref[...])                                # (TB, 128)


@jax.jit
def seqpeptide_forward(x, w1_k, w2_k, b2_k, w3_k, b3_k, wf_k, bf_k):
    """x = (vox, seq); vox unused (matches PyTorch forward). seq: (B,1,50)."""
    vox, seq = x
    del vox                                   # forward() only uses seq branch
    B = seq.shape[0]
    x2d = seq.reshape(B, IN_DIM).astype(F32)                       # squeeze(1)

    # --- trace-time weight prep -------------------------------------------
    # Fuse the bias-only-separated last two linears:
    #   (h @ W3 + b3) @ Wf + bf  ==  h @ (W3 @ Wf) + (b3 @ Wf + bf)
    w3f = jnp.dot(w3_k, wf_k, preferred_element_type=F32)          # (1024, 6)
    bff = jnp.dot(b3_k, wf_k, preferred_element_type=F32) + bf_k   # (1, 6)
    # Lane-dense output: zero-pad 6 -> 128 columns.
    w3f_p = jnp.zeros((H2, NF), F32).at[:, :CLASSES].set(w3f).astype(BF16)
    bff_p = jnp.zeros((1, NF), F32).at[:, :CLASSES].set(bff)
    # bf16 operands for the wide matmuls (f32 accumulation in-kernel).
    w1_f = w1_k.astype(F32)
    w2_bf = w2_k.astype(BF16)
    b2_f = b2_k.astype(F32)

    # --- batch tiling -------------------------------------------------------
    # Small batch: one step.  B >= 64: at least 2 parallel steps (v7x has two
    # TensorCores), tiles up to 512 rows (multiple of 8) to amortize per-step
    # pipeline overhead.  Weights + a (512,1024) activation stay << scoped
    # VMEM on all generations (v5e/v6e/v7x).
    if B < 64:
        TB = B
    else:
        TB = min(512, max(8, _round_up(pl.cdiv(B, 2), 8)))
    grid = (pl.cdiv(B, TB),)
    const = lambda i: (0, 0)

    flops = 2 * B * (IN_DIM * H1 + H1 * H2 + H2 * NF)
    bytes_accessed = (B * IN_DIM * 4 + B * NF * 4          # in/out activations
                      + IN_DIM * H1 * 4 + H1 * H2 * 2 + H2 * 4   # w1, w2, b2
                      + H2 * NF * 2 + NF * 4)                    # w3f, bff

    out = pl.pallas_call(
        seqpeptide_kernel,
        out_shape=jax.ShapeDtypeStruct((B, NF), F32),
        grid=grid,
        in_specs=[
            pl.BlockSpec((TB, IN_DIM), lambda i: (i, 0)),
            pl.BlockSpec((IN_DIM, H1), const),
            pl.BlockSpec((H1, H2), const),
            pl.BlockSpec((1, H2), const),
            pl.BlockSpec((H2, NF), const),
            pl.BlockSpec((1, NF), const),
        ],
        out_specs=pl.BlockSpec((TB, NF), lambda i: (i, 0)),
        compiler_params=pltpu.CompilerParams(
            dimension_semantics=("parallel",)),
        cost_estimate=pl.CostEstimate(flops=flops, transcendentals=0,
                                      bytes_accessed=bytes_accessed),
    )(x2d, w1_f, w2_bf, b2_f, w3f_p, bff_p)
    return out[:, :CLASSES]                                        # (B, 6)


def torch_reference(seq, w1, w2, b2, w3, b3, wf, bf):
    """Pure-JAX mirror of SEQPeptide.forward (default 'mlp' config)."""
    h = seq.reshape(seq.shape[0], IN_DIM)            # seq.squeeze(1)
    h = jax.nn.relu(h @ w1.T)                        # Linear(50,50,bias=False)
    h = jax.nn.relu(h @ w2.T + b2)                   # Linear(50,1024)
    h = h @ w3.T + b3                                # Linear(1024,256)
    return h @ wf.T + bf                             # seq_fc: Linear(256,6)


if __name__ == "__main__":
    B = 16
    H3 = 256
    keys = jax.random.split(jax.random.PRNGKey(0), 9)

    def u(key, shape, fan_in):
        s = 1.0 / float(fan_in) ** 0.5
        return jax.random.uniform(key, shape, F32, -s, s)

    # Parameters in PyTorch convention: weight (out_features, in_features).
    w1 = u(keys[0], (H1, IN_DIM), IN_DIM)            # Linear(50,50,bias=False)
    w2 = u(keys[1], (H2, H1), H1)                    # Linear(50,1024)
    b2 = u(keys[2], (H2,), H1)
    w3 = u(keys[3], (H3, H2), H2)                    # Linear(1024,256)
    b3 = u(keys[4], (H3,), H2)
    wf = u(keys[5], (CLASSES, H3), H3)               # seq_fc: Linear(256,6)
    bf = u(keys[6], (CLASSES,), H3)

    # Kernel layout: (in, out) weights so the kernel computes x @ W; biases
    # as (1, out) rows for lane-aligned broadcast adds.
    w1_k = w1.T
    w2_k = w2.T
    w3_k = w3.T
    wf_k = wf.T
    b2_k = b2.reshape(1, H2)
    b3_k = b3.reshape(1, H3)
    bf_k = bf.reshape(1, CLASSES)

    # Inputs: (vox, seq) like the PyTorch module; vox is unused by forward().
    vox = jax.random.normal(keys[7], (B, 2048), F32)
    seq = jax.random.normal(keys[8], (B, 1, IN_DIM), F32)

    out = seqpeptide_forward((vox, seq),
                             w1_k, w2_k, b2_k, w3_k, b3_k, wf_k, bf_k)
    out = jax.block_until_ready(out)

    ref = torch_reference(seq, w1, w2, b2, w3, b3, wf, bf)
    assert out.shape == (B, CLASSES), out.shape
    # bf16 MXU operands + fused W3@Wf reorder rounding slightly -> loosen tol.
    assert jnp.allclose(out, ref, atol=1e-2, rtol=1e-2), (
        float(jnp.max(jnp.abs(out - ref))))

    print("KERNEL_OK")
</pallas_src>

<mosaic_0001>
module attributes {stable_mosaic.version = 11 : i64} {
  func.func @seqpeptide_kernel(%arg0: i32, %arg1: memref<16x50xf32, #tpu.memory_space<vmem>>, %arg2: memref<50x50xf32, #tpu.memory_space<vmem>>, %arg3: memref<50x1024xbf16, #tpu.memory_space<vmem>>, %arg4: memref<1x1024xf32, #tpu.memory_space<vmem>>, %arg5: memref<1024x128xbf16, #tpu.memory_space<vmem>>, %arg6: memref<1x128xf32, #tpu.memory_space<vmem>>, %arg7: memref<16x128xf32, #tpu.memory_space<vmem>>) attributes {dimension_semantics = [#tpu.dimension_semantics<parallel>], iteration_bounds = array<i64: 1>, scalar_prefetch = 0 : i64, scratch_operands = 0 : i64, tpu.core_type = #tpu.core_type<tc>, window_params = [{transform_indices = @transform_0, window_bounds = array<i64: 16, 50>}, {pipeline_mode = #tpu.pipeline_mode<synchronous>, transform_indices = @transform_1, window_bounds = array<i64: 50, 50>}, {pipeline_mode = #tpu.pipeline_mode<synchronous>, transform_indices = @transform_2, window_bounds = array<i64: 50, 1024>}, {pipeline_mode = #tpu.pipeline_mode<synchronous>, transform_indices = @transform_3, window_bounds = array<i64: 1, 1024>}, {pipeline_mode = #tpu.pipeline_mode<synchronous>, transform_indices = @transform_4, window_bounds = array<i64: 1024, 128>}, {pipeline_mode = #tpu.pipeline_mode<synchronous>, transform_indices = @transform_5, window_bounds = array<i64: 1, 128>}, {transform_indices = @transform_6, window_bounds = array<i64: 16, 128>}]} {
    %c0 = arith.constant 0 : index
    %c0_0 = arith.constant 0 : index
    %0 = vector.load %arg1[%c0, %c0_0] : memref<16x50xf32, #tpu.memory_space<vmem>>, vector<16x50xf32>
    %c0_1 = arith.constant 0 : index
    %c0_2 = arith.constant 0 : index
    %1 = vector.load %arg2[%c0_1, %c0_2] : memref<50x50xf32, #tpu.memory_space<vmem>>, vector<50x50xf32>
    %cst = arith.constant dense<0.000000e+00> : vector<16x50xf32>
    %2 = tpu.matmul %0, %1, %cst {dimension_numbers = #tpu.dot_dimension_numbers<[1], [0], [0], [1], [0, 0, 1, 1], [], []>} : vector<16x50xf32>, vector<50x50xf32>, vector<16x50xf32> -> vector<16x50xf32>
    %cst_3 = arith.constant 0.000000e+00 : f32
    %3 = vector.broadcast %cst_3 : f32 to vector<16x50xf32>
    %4 = arith.maximumf %2, %3 : vector<16x50xf32>
    %5 = arith.truncf %4 : vector<16x50xf32> to vector<16x50xbf16>
    %c0_4 = arith.constant 0 : index
    %c0_5 = arith.constant 0 : index
    %6 = vector.load %arg3[%c0_4, %c0_5] : memref<50x1024xbf16, #tpu.memory_space<vmem>>, vector<50x1024xbf16>
    %cst_6 = arith.constant dense<0.000000e+00> : vector<16x1024xf32>
    %7 = tpu.matmul %5, %6, %cst_6 {dimension_numbers = #tpu.dot_dimension_numbers<[1], [0], [0], [1], [0, 0, 1, 1], [], []>} : vector<16x50xbf16>, vector<50x1024xbf16>, vector<16x1024xf32> -> vector<16x1024xf32>
    %c0_7 = arith.constant 0 : index
    %c0_8 = arith.constant 0 : index
    %8 = vector.load %arg4[%c0_7, %c0_8] : memref<1x1024xf32, #tpu.memory_space<vmem>>, vector<1x1024xf32>
    %9 = vector.broadcast %8 : vector<1x1024xf32> to vector<16x1024xf32>
    %10 = arith.addf %7, %9 : vector<16x1024xf32>
    %cst_9 = arith.constant 0.000000e+00 : f32
    %11 = vector.broadcast %cst_9 : f32 to vector<16x1024xf32>
    %12 = arith.maximumf %10, %11 : vector<16x1024xf32>
    %13 = arith.truncf %12 : vector<16x1024xf32> to vector<16x1024xbf16>
    %c0_10 = arith.constant 0 : index
    %c0_11 = arith.constant 0 : index
    %14 = vector.load %arg5[%c0_10, %c0_11] : memref<1024x128xbf16, #tpu.memory_space<vmem>>, vector<1024x128xbf16>
    %cst_12 = arith.constant dense<0.000000e+00> : vector<16x128xf32>
    %15 = tpu.matmul %13, %14, %cst_12 {dimension_numbers = #tpu.dot_dimension_numbers<[1], [0], [0], [1], [0, 0, 1, 1], [], []>} : vector<16x1024xbf16>, vector<1024x128xbf16>, vector<16x128xf32> -> vector<16x128xf32>
    %c0_13 = arith.constant 0 : index
    %c0_14 = arith.constant 0 : index
    %16 = vector.load %arg6[%c0_13, %c0_14] : memref<1x128xf32, #tpu.memory_space<vmem>>, vector<1x128xf32>
    %17 = vector.broadcast %16 : vector<1x128xf32> to vector<16x128xf32>
    %18 = arith.addf %15, %17 : vector<16x128xf32>
    %c0_15 = arith.constant 0 : index
    %c0_16 = arith.constant 0 : index
    %19 = vector.load %arg7[%c0_15, %c0_16] : memref<16x128xf32, #tpu.memory_space<vmem>>, vector<16x128xf32>
    tpu.vector_store %arg7[%c0_15, %c0_16], %18 {strides = array<i32>} : memref<16x128xf32, #tpu.memory_space<vmem>>, vector<16x128xf32>,
    return
  }
  func.func @transform_0(%arg0: i32) -> (i32, i32) {
    %c0_i32 = arith.constant 0 : i32
    %c0_i32_0 = arith.constant 0 : i32
    return %arg0, %c0_i32 : i32, i32
  }
  func.func @transform_1(%arg0: i32) -> (i32, i32) {
    %c0_i32 = arith.constant 0 : i32
    %c0_i32_0 = arith.constant 0 : i32
    %c0_i32_1 = arith.constant 0 : i32
    return %c0_i32, %c0_i32_0 : i32, i32
  }
  func.func @transform_2(%arg0: i32) -> (i32, i32) {
    %c0_i32 = arith.constant 0 : i32
    %c0_i32_0 = arith.constant 0 : i32
    %c0_i32_1 = arith.constant 0 : i32
    return %c0_i32, %c0_i32_0 : i32, i32
  }
  func.func @transform_3(%arg0: i32) -> (i32, i32) {
    %c0_i32 = arith.constant 0 : i32
    %c0_i32_0 = arith.constant 0 : i32
    %c0_i32_1 = arith.constant 0 : i32
    return %c0_i32, %c0_i32_0 : i32, i32
  }
  func.func @transform_4(%arg0: i32) -> (i32, i32) {
    %c0_i32 = arith.constant 0 : i32
    %c0_i32_0 = arith.constant 0 : i32
    %c0_i32_1 = arith.constant 0 : i32
    return %c0_i32, %c0_i32_0 : i32, i32
  }
  func.func @transform_5(%arg0: i32) -> (i32, i32) {
    %c0_i32 = arith.constant 0 : i32
    %c0_i32_0 = arith.constant 0 : i32
    %c0_i32_1 = arith.constant 0 : i32
    return %c0_i32, %c0_i32_0 : i32, i32
  }
  func.func @transform_6(%arg0: i32) -> (i32, i32) {
    %c0_i32 = arith.constant 0 : i32
    %c0_i32_0 = arith.constant 0 : i32
    return %arg0, %c0_i32 : i32, i32
  }
}

</mosaic_0001>

<bundles_post_ra>
// kernel: seqpeptide_forward.1
= control target key start
LH: loop header
LB: loop body
LE: loop exit
PB: predicated region body
PF: predicated region fallthrough
CT: control target
= control target key end

     0   :  { %vm40_vm0 = vcmask 1041408   ;;  %vm33_vm1 = vcmask 408576   ;;  %vm335_vm2 = vcmask 1040384   ;;  %v1540_v45 = vmov 0   ;;  %s1931_s1 = inlined_call_operand.vmem [shape: f32[50,50], index: 1, kind: input, shape index: {}]   ;;  %s1932_s0 = inlined_call_operand.vmem [shape: f32[16,50], index: 0, kind: input, shape index: {}]   ;;  %s1933_s2 = inlined_call_operand.vmem [shape: bf16[50,1024], index: 2, kind: input, shape index: {}]   ;;  %s1934_s4 = inlined_call_operand.vmem [shape: bf16[1024,128], index: 4, kind: input, shape index: {}]   ;;  %s1935_s3 = inlined_call_operand.vmem [shape: f32[1,1024], index: 3, kind: input, shape index: {}]   ;;  %s1936_s5 = inlined_call_operand.vmem [shape: f32[1,128], index: 5, kind: input, shape index: {}]   ;;  %s1937_s6 = inlined_call_operand.vmem [shape: f32[16,128], index: 6, kind: output, shape index: {}]  }
   0x1   :  { %v32_v0 = vld [vmem:[%s1931_s1 + $0x30] sm:$0x3]  ;;  %v31_v1 = vld [vmem:[%s1931_s1 + $0x28] sm:$0xff]  ;;  %v30_v2 = vld [vmem:[%s1931_s1 + $0x20] sm:$0xff]  ;;  %392 = vmatprep.mubr.bf16.mxu1 %v1540_v45 }
   0x2   :  { %1450 = vmatprep.subr.msk.mxu0 %vm40_vm0, %v32_v0  ;;  %v24_v3 = vld [vmem:[%s1932_s0] sm:$0xff]  ;;  %v29_v6 = vld [vmem:[%s1931_s1 + $0x18] sm:$0xff]  ;;  %v28_v13 = vld [vmem:[%s1931_s1 + $0x10] sm:$0xff] }
   0x3   :  { %1451 = vmatpush3.msk.msra.mxu0 %vm40_vm0, %v32_v0  ;;  %1464 = vmatprep.mubr.msk.f32.mxu0 %vm33_vm1, %v24_v3  ;;  %v146_v4 = vld [vmem:[%s1933_s2 + $0xc0] sm:$0x11]  ;;  %v147_v14 = vld [vmem:[%s1933_s2 + $0xc8] sm:$0x11]  ;;  %v148_v41 = vld [vmem:[%s1933_s2 + $0xd0] sm:$0x11] }
   0x4   :  { %1452 = vmatprep.subr.mxu0 %v31_v1  ;;  %v138_v5 = vld [vmem:[%s1933_s2 + $0x80] sm:$0xff]  ;;  %v1273_v7 = vcombine.high %v146_v4, %v146_v4  ;;  %v1272_v8 = vcombine.low %v146_v4, %v146_v4  ;;  %v27_v17 = vld [vmem:[%s1931_s1 + $0x8] sm:$0xff]  ;;  %v1274_v19 = vcombine.low %v147_v14, %v147_v14  ;;  %v1275_v23 = vcombine.high %v147_v14, %v147_v14  ;;  %v149_v42 = vld [vmem:[%s1933_s2 + $0xd8] sm:$0x11] }
   0x5   :  { %1453 = vmatpush3.msra.mxu0 %v31_v1  ;;  %v142_v9 = vld [vmem:[%s1933_s2 + $0xa0] sm:$0xff]  ;;  %v139_v21 = vld [vmem:[%s1933_s2 + $0x88] sm:$0xff]  ;;  %v1277_v43 = vcombine.high %v148_v41, %v148_v41  ;;  %v1279_v44 = vcombine.high %v149_v42, %v149_v42  ;;  %v1276_v47 = vcombine.low %v148_v41, %v148_v41  ;;  %v1278_v48 = vcombine.low %v149_v42, %v149_v42  ;;  %v140_v49 = vld [vmem:[%s1933_s2 + $0x90] sm:$0xff] }
   0x6   :  { %1454 = vmatprep.subr.mxu0 %v30_v2  ;;  %v1265_v10 = vcombine.high %v138_v5, %v142_v9  ;;  %v130_v11 = vld [vmem:[%s1933_s2 + $0x40] sm:$0xff]  ;;  %1280 = vmatprep.subr.msk.bf16.mxu1 %vm335_vm2, %v1273_v7  ;;  %v337_v15 = vsel %vm335_vm2, %v1272_v8, 0  ;;  %v1264_v16 = vcombine.low %v138_v5, %v142_v9  ;;  %v143_v22 = vld [vmem:[%s1933_s2 + $0xa8] sm:$0xff]  ;;  %v343_v26 = vsel %vm335_vm2, %v1274_v19, 0  ;;  %v144_v51 = vld [vmem:[%s1933_s2 + $0xb0] sm:$0xff] }
   0x7   :  { %v134_v12 = vld [vmem:[%s1933_s2 + $0x60] sm:$0xff]  ;;  %1455 = vmatpush3.msra.mxu0 %v30_v2  ;;  %369 = vmatpush1.bf16.msra.mxu1 %v337_v15  ;;  %v25_v24 = vld [vmem:[%s1932_s0 + $0x8] sm:$0xff]  ;;  %v1267_v27 = vcombine.high %v139_v21, %v143_v22  ;;  %v1266_v30 = vcombine.low %v139_v21, %v143_v22  ;;  %v141_v52 = vld [vmem:[%s1933_s2 + $0x98] sm:$0xff]  ;;  %v349_v56 = vsel %vm335_vm2, %v1276_v47, 0  ;;  %v355_v58 = vsel %vm335_vm2, %v1278_v48, 0 }
   0x8   :  { %1456 = vmatprep.subr.mxu0 %v29_v6  ;;  %370 = vmatprep.subr.bf16.mxu1 %v1265_v10  ;;  %v1257_v18 = vcombine.high %v130_v11, %v134_v12  ;;  %v26_v20 = vld [vmem:[%s1931_s1] sm:$0xff]  ;;  %v1256_v25 = vcombine.low %v130_v11, %v134_v12  ;;  %v131_v28 = vld [vmem:[%s1933_s2 + $0x48] sm:$0xff]  ;;  %v145_v53 = vld [vmem:[%s1933_s2 + $0xb8] sm:$0xff]  ;;  %v1269_v59 = vcombine.high %v140_v49, %v144_v51 }
   0x9   :  { %1457 = vmatpush3.msra.mxu0 %v29_v6  ;;  %v135_v29 = vld [vmem:[%s1933_s2 + $0x68] sm:$0xff]  ;;  %v122_v33 = vld [vmem:[%s1933_s2] sm:$0xff]  ;;  %v1271_v60 = vcombine.high %v141_v52, %v145_v53  ;;  %v132_v61 = vld [vmem:[%s1933_s2 + $0x50] sm:$0xff]  ;;  %v1268_v1 = vcombine.low %v140_v49, %v144_v51  ;;  %v1270_v2 = vcombine.low %v141_v52, %v145_v53  ;;  %v152_v49 = vlaneseq }
   0xa   :  { %1458 = vmatprep.subr.mxu0 %v28_v13  ;;  %v1259_v31 = vcombine.high %v131_v28, %v135_v29  ;;  %v1258_v32 = vcombine.low %v131_v28, %v135_v29  ;;  %v126_v34 = vld [vmem:[%s1933_s2 + $0x20] sm:$0xff]  ;;  %v123_v35 = vld [vmem:[%s1933_s2 + $0x8] sm:$0xff]  ;;  %v136_v62 = vld [vmem:[%s1933_s2 + $0x70] sm:$0xff] }
   0xb   :  { %1459 = vmatpush3.msra.mxu0 %v28_v13  ;;  %371 = vmatpush1.bf16.msra.mxu1 %v1264_v16  ;;  %v1249_v36 = vcombine.high %v122_v33, %v126_v34  ;;  %v127_v37 = vld [vmem:[%s1933_s2 + $0x28] sm:$0xff]  ;;  %v1248_v40 = vcombine.low %v122_v33, %v126_v34  ;;  %v133_v63 = vld [vmem:[%s1933_s2 + $0x58] sm:$0xff]  ;;  %v1261_v3 = vcombine.high %v132_v61, %v136_v62  ;;  %v124_v5 = vld [vmem:[%s1933_s2 + $0x10] sm:$0xff] }
   0xc   :  { %1460 = vmatprep.subr.mxu0 %v27_v17  ;;  %372 = vmatprep.subr.bf16.mxu1 %v1257_v18  ;;  %v1250_v38 = vcombine.low %v123_v35, %v127_v37  ;;  %v1251_v39 = vcombine.high %v123_v35, %v127_v37  ;;  %v137_v0 = vld [vmem:[%s1933_s2 + $0x78] sm:$0xff]  ;;  %v128_v6 = vld [vmem:[%s1933_s2 + $0x30] sm:$0xff]  ;;  %v1260_v9 = vcombine.low %v132_v61, %v136_v62  ;;  %v1489_v28 = vld [vmem:[%s1934_s4 + $0xe0] sm:$0xff]  }
   0xd   :  { %1461 = vmatpush3.msra.mxu0 %v27_v17  ;;  %v1263_v4 = vcombine.high %v133_v63, %v137_v0  ;;  %v125_v7 = vld [vmem:[%s1933_s2 + $0x18] sm:$0xff]  ;;  %v1262_v10 = vcombine.low %v133_v63, %v137_v0  ;;  %v1253_v11 = vcombine.high %v124_v5, %v128_v6  ;;  %v1252_v13 = vcombine.low %v124_v5, %v128_v6  ;;  %v1480_v19 = vld [vmem:[%s1934_s4 + $0x70] sm:$0xff]   ;;  %v1490_v29 = vld [vmem:[%s1934_s4 + $0x20] sm:$0xff]  }
   0xe   :  { %1462 = vmatprep.subr.mxu0 %v26_v20  ;;  %v129_v8 = vld [vmem:[%s1933_s2 + $0x38] sm:$0xff]  ;;  %v1482_v21 = vld [vmem:[%s1934_s4 + $0x30] sm:$0xff]   ;;  %v1502_v41 = vld [vmem:[%s1934_s4 + $0x8] sm:$0xff]  }
   0xf   :  { %1463 = vmatpush3.msra.mxu0 %v26_v20  ;;  %373 = vmatpush1.bf16.msra.mxu1 %v1256_v25  ;;  %v1255_v12 = vcombine.high %v125_v7, %v129_v8  ;;  %v1254_v14 = vcombine.low %v125_v7, %v129_v8  ;;  %v1476_v15 = vld [vmem:[%s1934_s4 + $0x78] sm:$0xff]   ;;  %v1481_v20 = vld [vmem:[%s1934_s4 + $0xf0] sm:$0xff]   ;;  %v1486_v25 = vld [vmem:[%s1934_s4 + $0x28] sm:$0xff]  }
  0x10   :  { %1465 = vmatmul.mubr.msk.f32.vlgmr.msra.gmra.mxu0 %vm33_vm1, %v25_v24  ;;  %1282 = vmatprep.subr.msk.bf16.mxu0 %vm335_vm2, %v1275_v23  ;;  %v1477_v16 = vld [vmem:[%s1934_s4 + $0xf8] sm:$0xff]   ;;  %v1483_v22 = vld [vmem:[%s1934_s4 + $0xb0] sm:$0xff]   ;;  %v1484_v23 = vld [vmem:[%s1934_s4 + $0x68] sm:$0xff]  }
  0x11   :  { %412 = vmatpush1.bf16.msra.mxu0 %v343_v26  ;;  %374 = vmatprep.subr.bf16.mxu1 %v1249_v36  ;;  %v1478_v17 = vld [vmem:[%s1934_s4 + $0x38] sm:$0xff]   ;;  %v1485_v24 = vld [vmem:[%s1934_s4 + $0xe8] sm:$0xff]   ;;  %v1496_v35 = vld [vmem:[%s1934_s4 + $0x50] sm:$0xff]  }
  0x12   :  { %413 = vmatprep.subr.bf16.mxu0 %v1267_v27  ;;  %435 = vmatprep.mubr.bf16.mxu0 %v1540_v45  ;;  %v1479_v18 = vld [vmem:[%s1934_s4 + $0xb8] sm:$0xff]   ;;  %v1487_v26 = vld [vmem:[%s1934_s4 + $0xa8] sm:$0xff]   ;;  %v1488_v27 = vld [vmem:[%s1934_s4 + $0x60] sm:$0xff]  }
  0x13   :  { %375 = vmatpush1.bf16.msra.mxu1 %v1248_v40  ;;  %v1494_v33 = vld [vmem:[%s1934_s4 + $0x18] sm:$0xff]   ;;  %v1497_v36 = vld [vmem:[%s1934_s4 + $0xd0] sm:$0xff]   ;;  %v1501_v40 = vld [vmem:[%s1934_s4 + $0xc8] sm:$0xff]  }
  0x14   :  { %1284 = vmatprep.subr.msk.bf16.mxu1 %vm335_vm2, %v1277_v43  ;;  %v1495_v34 = vld [vmem:[%s1934_s4 + $0x98] sm:$0xff]   ;;  %v1498_v37 = vld [vmem:[%s1934_s4 + $0x10] sm:$0xff]   ;;  %v1503_v42 = vld [vmem:[%s1934_s4 + $0x88] sm:$0xff]  }
  0x15   :  { %414 = vmatpush1.bf16.msra.mxu0 %v1266_v30  ;;  %v1491_v30 = vld [vmem:[%s1934_s4 + $0xa0] sm:$0xff]   ;;  %v1508_v47 = vld [vmem:[%s1934_s4 + $0x178] sm:$0xff]  }
  0x16   :  { %415 = vmatprep.subr.bf16.mxu0 %v1259_v31  ;;  %v1492_v31 = vld [vmem:[%s1934_s4 + $0x58] sm:$0xff]   ;;  %v1504_v43 = vld [vmem:[%s1934_s4 + $0x40] sm:$0xff]  }
  0x17   :  { %v1509_v48 = vld [vmem:[%s1934_s4 + $0x1f8] sm:$0xff]  }
  0x19   :  { %416 = vmatpush1.bf16.msra.mxu0 %v1258_v32  ;;  %v1493_v32 = vld [vmem:[%s1934_s4 + $0xd8] sm:$0xff]  }
  0x1a   :  { %417 = vmatprep.subr.bf16.mxu0 %v1251_v39  ;;  %v1500_v39 = vld [vmem:[%s1934_s4 + $0x48] sm:$0xff]  }
  0x1d   :  { %418 = vmatpush1.bf16.msra.mxu0 %v1250_v38  ;;  %v1499_v38 = vld [vmem:[%s1934_s4 + $0x90] sm:$0xff]  }
  0x1e   :  { %1286 = vmatprep.subr.msk.bf16.mxu0 %vm335_vm2, %v1279_v44  ;;  %v1505_v44 = vld [vmem:[%s1934_s4 + $0xc0] sm:$0xff]  }
  0xd0   :  { %v1466_v46 = vpop.f32.mrf.mxu0 }
  0xd1   :  { %v120_v54 = vmax.f32 %v1466_v46, 0.0  ;;  %v1507_v46 = vld [vmem:[%s1934_s4 + $0x80] sm:$0xff]  }
  0xd2   :  { %v110_v50 = vpop.f32.mrf.mxu0 }
  0xd3   :  { %v119_v55 = vmax.f32 %v110_v50, 0.0  ;;  %v1803_v50 = vshrl.u32 %v152_v49, 7 }
  0xd5   :  { %v121_v57 = vpack.c.bf16 %v120_v54, %v119_v55  ;;  %v158_v51 = vsub.s32 1, %v1803_v50  ;;  %v166_v52 = vsub.s32 3, %v1803_v50  ;;  %v154_v53 = vsub.s32 0, %v1803_v50  ;;  %v1812_v55 = vld [vmem:[%s1935_s3] sm:$0xff] }
  0xd6   :  { %v162_v54 = vsub.s32 2, %v1803_v50 }
  0xd7   :  { %1281 = vmatmul.mubr.msk.bf16.vlgmr.msra.gmra.mxu1 %vm33_vm1, %v121_v57  ;;  %1283 = vmatmul.mubr.msk.bf16.vlgmr.msra.gmra.mxu0 %vm33_vm1, %v121_v57 }
  0xd8   :  { %455 = vmatpush1.bf16.msra.mxu1 %v349_v56  ;;  %498 = vmatpush1.bf16.msra.mxu0 %v355_v58  ;;  %v159_v58 = vrot.slane %v1812_v55, %v158_v51  ;;  %v163_v61 = vrot.slane %v1812_v55, %v162_v54  ;;  %v1523_v54 = vld [vmem:[%s1934_s4 + $0x1a0] sm:$0xff]  }
  0xd9   :  { %456 = vmatprep.subr.bf16.mxu1 %v1269_v59  ;;  %499 = vmatprep.subr.bf16.mxu0 %v1271_v60  ;;  %v167_v59 = vrot.slane %v1812_v55, %v166_v52  ;;  %v155_v60 = vrot.slane %v1812_v55, %v154_v53  ;;  %v1522_v53 = vld [vmem:[%s1934_s4 + $0x120] sm:$0xff]  }
  0xda   :  { %478 = vmatprep.mubr.bf16.mxu1 %v1540_v45  ;;  %521 = vmatprep.mubr.bf16.mxu0 %v1540_v45  ;;  %v1506_v45 = vld [vmem:[%s1934_s4] sm:$0xff]  }
  0xdc   :  { %457 = vmatpush1.bf16.msra.mxu1 %v1268_v1  ;;  %500 = vmatpush1.bf16.msra.mxu0 %v1270_v2 }
  0xdd   :  { %458 = vmatprep.subr.bf16.mxu1 %v1261_v3  ;;  %501 = vmatprep.subr.bf16.mxu0 %v1263_v4 }
  0xe0   :  { %459 = vmatpush1.bf16.msra.mxu1 %v1260_v9  ;;  %502 = vmatpush1.bf16.msra.mxu0 %v1262_v10 }
  0xe1   :  { %460 = vmatprep.subr.bf16.mxu1 %v1253_v11  ;;  %503 = vmatprep.subr.bf16.mxu0 %v1255_v12 }
  0xe4   :  { %461 = vmatpush1.bf16.msra.mxu1 %v1252_v13  ;;  %504 = vmatpush1.bf16.msra.mxu0 %v1254_v14 }
  0xe5   :  { %1362 = vmatprep.subr.bf16.mxu1 %v1476_v15  ;;  %1384 = vmatprep.subr.bf16.mxu0 %v1477_v16 }
  0xe7   :  { %1285 = vmatmul.mubr.msk.bf16.vlgmr.msra.gmra.mxu1 %vm33_vm1, %v121_v57  ;;  %1287 = vmatmul.mubr.msk.bf16.vlgmr.msra.gmra.mxu0 %vm33_vm1, %v121_v57 }
  0xe8   :  { %1363 = vmatpush3.bf16.msra.mxu1 %v1478_v17  ;;  %1385 = vmatpush3.bf16.msra.mxu0 %v1479_v18 }
  0xe9   :  { %1364 = vmatprep.subr.bf16.mxu1 %v1480_v19  ;;  %1386 = vmatprep.subr.bf16.mxu0 %v1481_v20 }
  0xec   :  { %1365 = vmatpush3.bf16.msra.mxu1 %v1482_v21  ;;  %1387 = vmatpush3.bf16.msra.mxu0 %v1483_v22  ;;  %v1510_v22 = vld [vmem:[%s1934_s4 + $0x138] sm:$0xff]  }
  0xed   :  { %1366 = vmatprep.subr.bf16.mxu1 %v1484_v23  ;;  %1388 = vmatprep.subr.bf16.mxu0 %v1485_v24  ;;  %v1511_v23 = vld [vmem:[%s1934_s4 + $0x1b8] sm:$0xff]  }
  0xf0   :  { %1367 = vmatpush3.bf16.msra.mxu1 %v1486_v25  ;;  %1389 = vmatpush3.bf16.msra.mxu0 %v1487_v26  ;;  %v1512_v26 = vld [vmem:[%s1934_s4 + $0x170] sm:$0xff]  }
  0xf1   :  { %1368 = vmatprep.subr.bf16.mxu1 %v1488_v27  ;;  %1390 = vmatprep.subr.bf16.mxu0 %v1489_v28  ;;  %v1513_v27 = vld [vmem:[%s1934_s4 + $0x1f0] sm:$0xff]   ;;  %v174_v28 = vsub.s32 5, %v1803_v50 }
  0xf4   :  { %1369 = vmatpush3.bf16.msra.mxu1 %v1490_v29  ;;  %1391 = vmatpush3.bf16.msra.mxu0 %v1491_v30  ;;  %v182_v29 = vsub.s32 7, %v1803_v50  ;;  %v1514_v30 = vld [vmem:[%s1934_s4 + $0x130] sm:$0xff]  }
  0xf5   :  { %1370 = vmatprep.subr.bf16.mxu1 %v1492_v31  ;;  %1392 = vmatprep.subr.bf16.mxu0 %v1493_v32  ;;  %v1515_v31 = vld [vmem:[%s1934_s4 + $0x1b0] sm:$0xff]  }
  0xf8   :  { %1371 = vmatpush3.bf16.msra.mxu1 %v1494_v33  ;;  %1393 = vmatpush3.bf16.msra.mxu0 %v1495_v34  ;;  %v1516_v34 = vld [vmem:[%s1934_s4 + $0x168] sm:$0xff]  }
  0xf9   :  { %1372 = vmatprep.subr.bf16.mxu1 %v1496_v35  ;;  %1394 = vmatprep.subr.bf16.mxu0 %v1497_v36  ;;  %v1517_v35 = vld [vmem:[%s1934_s4 + $0x1e8] sm:$0xff]   ;;  %v175_v36 = vrot.slane %v1812_v55, %v174_v28 }
  0xfc   :  { %1373 = vmatpush3.bf16.msra.mxu1 %v1498_v37  ;;  %1395 = vmatpush3.bf16.msra.mxu0 %v1499_v38  ;;  %v183_v37 = vrot.slane %v1812_v55, %v182_v29 }
  0xfd   :  { %1374 = vmatprep.subr.bf16.mxu1 %v1500_v39  ;;  %1396 = vmatprep.subr.bf16.mxu0 %v1501_v40  ;;  %v1518_v40 = vld [vmem:[%s1934_s4 + $0x128] sm:$0xff]  }
 0x100   :  { %1375 = vmatpush3.bf16.msra.mxu1 %v1502_v41  ;;  %1397 = vmatpush3.bf16.msra.mxu0 %v1503_v42  ;;  %v1519_v41 = vld [vmem:[%s1934_s4 + $0x1a8] sm:$0xff]  }
 0x101   :  { %1376 = vmatprep.subr.bf16.mxu1 %v1504_v43  ;;  %1398 = vmatprep.subr.bf16.mxu0 %v1505_v44  ;;  %v1520_v44 = vld [vmem:[%s1934_s4 + $0x160] sm:$0xff]  }
 0x104   :  { %1377 = vmatpush3.bf16.msra.mxu1 %v1506_v45  ;;  %1399 = vmatpush3.bf16.msra.mxu0 %v1507_v46  ;;  %v1521_v45 = vld [vmem:[%s1934_s4 + $0x1e0] sm:$0xff]  }
 0x105   :  { %1406 = vmatprep.subr.bf16.mxu1 %v1508_v47  ;;  %1428 = vmatprep.subr.bf16.mxu0 %v1509_v48 }
 0x197   :  { %v394_v56 = vpop.f32.mrf.mxu1  ;;  %v437_v57 = vpop.f32.mrf.mxu0 }
 0x198   :  { %v395_v6 = vadd.f32 %v394_v56, %v155_v60  ;;  %v438_v7 = vadd.f32 %v437_v57, %v163_v61  ;;  %v1524_v56 = vld [vmem:[%s1934_s4 + $0x158] sm:$0xff]  }
 0x199   :  { %v396_v62 = vpop.f32.mrf.mxu1  ;;  %v439_v63 = vpop.f32.mrf.mxu0  ;;  %v1525_v57 = vld [vmem:[%s1934_s4 + $0x1d8] sm:$0xff]  }
 0x19a   :  { %v397_v2 = vadd.f32 %v396_v62, %v159_v58  ;;  %v440_v3 = vadd.f32 %v439_v63, %v167_v59  ;;  %v532_v18 = vmax.f32 %v395_v6, 0.0  ;;  %v534_v19 = vmax.f32 %v438_v7, 0.0  ;;  %v1530_v6 = vld [vmem:[%s1934_s4 + $0x110] sm:$0xff]  }
 0x19b   :  { %v398_v0 = vpop.f32.mrf.mxu1  ;;  %v441_v1 = vpop.f32.mrf.mxu0  ;;  %v1531_v7 = vld [vmem:[%s1934_s4 + $0x190] sm:$0xff]  }
 0x19c   :  { %v399_v4 = vadd.f32 %v398_v0, %v155_v60  ;;  %v442_v5 = vadd.f32 %v441_v1, %v163_v61  ;;  %v533_v14 = vmax.f32 %v397_v2, 0.0  ;;  %v535_v15 = vmax.f32 %v440_v3, 0.0  ;;  %v1526_v0 = vld [vmem:[%s1934_s4 + $0x118] sm:$0xff]   ;;  %v1528_v2 = vld [vmem:[%s1934_s4 + $0x150] sm:$0xff]  }
 0x19d   :  { %v400_v8 = vpop.f32.mrf.mxu1  ;;  %v443_v9 = vpop.f32.mrf.mxu0  ;;  %v1527_v1 = vld [vmem:[%s1934_s4 + $0x198] sm:$0xff]   ;;  %v1529_v3 = vld [vmem:[%s1934_s4 + $0x1d0] sm:$0xff]  }
 0x19e   :  { %v401_v10 = vadd.f32 %v400_v8, %v159_v58  ;;  %v444_v11 = vadd.f32 %v443_v9, %v167_v59  ;;  %v540_v12 = vmax.f32 %v399_v4, 0.0  ;;  %v542_v13 = vmax.f32 %v442_v5, 0.0  ;;  %v1532_v8 = vld [vmem:[%s1934_s4 + $0x148] sm:$0xff]  }
 0x19f   :  { %v170_v4 = vsub.s32 4, %v1803_v50  ;;  %v178_v5 = vsub.s32 6, %v1803_v50  ;;  %v1533_v50 = vld [vmem:[%s1934_s4 + $0x1c8] sm:$0xff]  }
 0x1a0   :  { %v541_v16 = vmax.f32 %v401_v10, 0.0  ;;  %v543_v17 = vmax.f32 %v444_v11, 0.0  ;;  %v548_v24 = vpack.c.bf16 %v540_v12, %v532_v18  ;;  %v550_v25 = vpack.c.bf16 %v542_v13, %v534_v19  ;;  %v1534_v11 = vld [vmem:[%s1934_s4 + $0x108] sm:$0xff]   ;;  %v1538_v18 = vld [vmem:[%s1934_s4 + $0x100] sm:$0xff]  }
 0x1a1   :  { %v171_v9 = vrot.slane %v1812_v55, %v170_v4  ;;  %v179_v10 = vrot.slane %v1812_v55, %v178_v5  ;;  %v1535_v12 = vld [vmem:[%s1934_s4 + $0x188] sm:$0xff]   ;;  %v1537_v55 = vld [vmem:[%s1934_s4 + $0x1c0] sm:$0xff]  }
 0x1a2   :  { %v549_v20 = vpack.c.bf16 %v541_v16, %v533_v14  ;;  %v551_v21 = vpack.c.bf16 %v543_v17, %v535_v15  ;;  %v1536_v15 = vld [vmem:[%s1934_s4 + $0x140] sm:$0xff]  }
 0x1a3   :  { %v1539_v19 = vld [vmem:[%s1934_s4 + $0x180] sm:$0xff]  }
 0x1a4   :  { %1107 = vmatprep.mubr.bf16.mxu1 %v549_v20  ;;  %1148 = vmatprep.mubr.bf16.mxu0 %v551_v21 }
 0x1a5   :  { %1108 = vmatmul.mubr.bf16.vlgmr.msra.gmra.mxu1 %v548_v24  ;;  %1149 = vmatmul.mubr.bf16.vlgmr.msra.gmra.mxu0 %v550_v25 }
 0x1a6   :  { %1407 = vmatpush3.bf16.msra.mxu1 %v1510_v22  ;;  %1429 = vmatpush3.bf16.msra.mxu0 %v1511_v23 }
 0x1a7   :  { %v1838_v32 = vpop.f32.mrf.mxu1  ;;  %v1840_v33 = vpop.f32.mrf.mxu0  ;;  %1408 = vmatprep.subr.bf16.mxu1 %v1512_v26  ;;  %1430 = vmatprep.subr.bf16.mxu0 %v1513_v27 }
 0x1a8   :  { %v481_v16 = vadd.f32 %v1838_v32, %v171_v9  ;;  %v524_v17 = vadd.f32 %v1840_v33, %v179_v10  ;;  %v1288_v33 = vld [vmem:[%s1936_s5] ss:$0 sm:$0xff] }
 0x1a9   :  { %v482_v38 = vpop.f32.mrf.mxu1  ;;  %v525_v39 = vpop.f32.mrf.mxu0 }
 0x1aa   :  { %1409 = vmatpush3.bf16.msra.mxu1 %v1514_v30  ;;  %1431 = vmatpush3.bf16.msra.mxu0 %v1515_v31  ;;  %v483_v46 = vadd.f32 %v482_v38, %v175_v36  ;;  %v526_v47 = vadd.f32 %v525_v39, %v183_v37  ;;  %v536_v22 = vmax.f32 %v481_v16, 0.0  ;;  %v538_v23 = vmax.f32 %v524_v17, 0.0 }
 0x1ab   :  { %v484_v42 = vpop.f32.mrf.mxu1  ;;  %v527_v43 = vpop.f32.mrf.mxu0  ;;  %1410 = vmatprep.subr.bf16.mxu1 %v1516_v34  ;;  %1432 = vmatprep.subr.bf16.mxu0 %v1517_v35 }
 0x1ac   :  { %v537_v58 = vmax.f32 %v483_v46, 0.0  ;;  %v539_v59 = vmax.f32 %v526_v47, 0.0  ;;  %v485_v13 = vadd.f32 %v484_v42, %v171_v9  ;;  %v528_v14 = vadd.f32 %v527_v43, %v179_v10 }
 0x1ad   :  { %v486_v48 = vpop.f32.mrf.mxu1  ;;  %v529_v49 = vpop.f32.mrf.mxu0 }
 0x1ae   :  { %v487_v51 = vadd.f32 %v486_v48, %v175_v36  ;;  %v530_v52 = vadd.f32 %v529_v49, %v183_v37  ;;  %1411 = vmatpush3.bf16.msra.mxu1 %v1518_v40  ;;  %1433 = vmatpush3.bf16.msra.mxu0 %v1519_v41  ;;  %v544_v20 = vmax.f32 %v485_v13, 0.0  ;;  %v546_v21 = vmax.f32 %v528_v14, 0.0 }
 0x1af   :  { %1412 = vmatprep.subr.bf16.mxu1 %v1520_v44  ;;  %1434 = vmatprep.subr.bf16.mxu0 %v1521_v45 }
 0x1b0   :  { %v545_v60 = vmax.f32 %v487_v51, 0.0  ;;  %v547_v61 = vmax.f32 %v530_v52, 0.0  ;;  %v552_v24 = vpack.c.bf16 %v544_v20, %v536_v22  ;;  %v554_v25 = vpack.c.bf16 %v546_v21, %v538_v23 }
 0x1b2   :  { %v553_v62 = vpack.c.bf16 %v545_v60, %v537_v58  ;;  %v555_v63 = vpack.c.bf16 %v547_v61, %v539_v59  ;;  %1413 = vmatpush3.bf16.msra.mxu1 %v1522_v53  ;;  %1435 = vmatpush3.bf16.msra.mxu0 %v1523_v54 }
 0x1b3   :  { %1414 = vmatprep.subr.bf16.mxu1 %v1524_v56  ;;  %1436 = vmatprep.subr.bf16.mxu0 %v1525_v57 }
 0x1b4   :  { %1189 = vmatprep.mubr.bf16.mxu1 %v553_v62  ;;  %1230 = vmatprep.mubr.bf16.mxu0 %v555_v63 }
 0x1b6   :  { %1415 = vmatpush3.bf16.msra.mxu1 %v1526_v0  ;;  %1437 = vmatpush3.bf16.msra.mxu0 %v1527_v1 }
 0x1b7   :  { %1416 = vmatprep.subr.bf16.mxu1 %v1528_v2  ;;  %1438 = vmatprep.subr.bf16.mxu0 %v1529_v3 }
 0x1ba   :  { %1417 = vmatpush3.bf16.msra.mxu1 %v1530_v6  ;;  %1439 = vmatpush3.bf16.msra.mxu0 %v1531_v7 }
 0x1bb   :  { %1418 = vmatprep.subr.bf16.mxu1 %v1532_v8  ;;  %1440 = vmatprep.subr.bf16.mxu0 %v1533_v50 }
 0x1be   :  { %1419 = vmatpush3.bf16.msra.mxu1 %v1534_v11  ;;  %1441 = vmatpush3.bf16.msra.mxu0 %v1535_v12 }
 0x1bf   :  { %1420 = vmatprep.subr.bf16.mxu1 %v1536_v15  ;;  %1442 = vmatprep.subr.bf16.mxu0 %v1537_v55 }
 0x1c2   :  { %1421 = vmatpush3.bf16.msra.mxu1 %v1538_v18  ;;  %1443 = vmatpush3.bf16.msra.mxu0 %v1539_v19 }
 0x1c5   :  { %1190 = vmatmul.mubr.bf16.vlgmr.msra.gmra.mxu1 %v552_v24  ;;  %1231 = vmatmul.mubr.bf16.vlgmr.msra.gmra.mxu0 %v554_v25 }
 0x265   :  { %v1378_v26 = vpop.f32.mrf.mxu1  ;;  %v1400_v27 = vpop.f32.mrf.mxu0 }
 0x267   :  { %v1379_v28 = vpop.f32.mrf.mxu1  ;;  %v1401_v29 = vpop.f32.mrf.mxu0 }
 0x268   :  { %v1380_v32 = vadd.f32 %v1379_v28, %v1378_v26  ;;  %v1402_v40 = vadd.f32 %v1401_v29, %v1400_v27 }
 0x269   :  { %v1381_v30 = vpop.f32.mrf.mxu1  ;;  %v1403_v31 = vpop.f32.mrf.mxu0 }
 0x26a   :  { %v1110_v36 = vadd.f32 %v1380_v32, %v1288_v33 }
 0x26b   :  { %v1382_v34 = vpop.f32.mrf.mxu1  ;;  %v1404_v35 = vpop.f32.mrf.mxu0 }
 0x26c   :  { %v1383_v37 = vadd.f32 %v1382_v34, %v1381_v30  ;;  %v1151_v43 = vadd.f32 %v1402_v40, %v1110_v36  ;;  %v1405_v48 = vadd.f32 %v1404_v35, %v1403_v31 }
 0x26e   :  { %v1113_v44 = vadd.f32 %v1383_v37, %v1288_v33 }
 0x270   :  { %v1154_v54 = vadd.f32 %v1405_v48, %v1113_v44 }
 0x285   :  { %v1422_v38 = vpop.f32.mrf.mxu1  ;;  %v1444_v39 = vpop.f32.mrf.mxu0 }
 0x287   :  { %v1423_v41 = vpop.f32.mrf.mxu1  ;;  %v1445_v42 = vpop.f32.mrf.mxu0 }
 0x288   :  { %v1424_v45 = vadd.f32 %v1423_v41, %v1422_v38  ;;  %v1446_v51 = vadd.f32 %v1445_v42, %v1444_v39 }
 0x289   :  { %v1425_v46 = vpop.f32.mrf.mxu1  ;;  %v1447_v47 = vpop.f32.mrf.mxu0 }
 0x28a   :  { %v1192_v49 = vadd.f32 %v1424_v45, %v1151_v43 }
 0x28b   :  { %v1426_v52 = vpop.f32.mrf.mxu1  ;;  %v1448_v53 = vpop.f32.mrf.mxu0 }
 0x28c   :  { %v1233_v56 = vadd.f32 %v1446_v51, %v1192_v49  ;;  %v1427_v57 = vadd.f32 %v1426_v52, %v1425_v46  ;;  %v1449_v59 = vadd.f32 %v1448_v53, %v1447_v47 }
 0x28e   :  { %1239 = vst [vmem:[%s1937_s6] sm:$0xff] %v1233_v56  ;;  %v1195_v58 = vadd.f32 %v1427_v57, %v1154_v54 }
 0x290   :  { %v1236_v60 = vadd.f32 %v1449_v59, %v1195_v58 }
 0x292   :  { %1240 = vst [vmem:[%s1937_s6 + $0x8] sm:$0xff] %v1236_v60 }

</bundles_post_ra>
